<compile_context>
chip_gen: v7x
topology: tpu7x:2x2x1
jax: 0.10.0
libtpu: 0.0.40
codegen_flags: <defaults>
</compile_context>

<pallas_src>
import jax
import jax.numpy as jnp
from jax.experimental import pallas as pl
from jax.experimental.pallas import tpu as pltpu

_LANES = 1024                      # lane-dense width: large multiple of 128
_TARGET_BLOCK_BYTES = 4 << 20      # ~4 MiB per block (v7x-safe with 2x double buffering)
_PALLAS_MIN_BYTES = 256 << 10      # below this, let XLA fuse a bare ReLU


def _relu_kernel(x_ref, o_ref):
    # Elementwise ReLU on the current VMEM tile (VPU op, scalar 0 constant).
    o_ref[...] = jnp.maximum(x_ref[...], 0)


def _round_up(x: int, m: int) -> int:
    return ((x + m - 1) // m) * m


def rectified_linear(x: jax.Array, *, force_pallas: bool = False) -> jax.Array:
    """Pallas implementation of RectifiedLinear.forward (ReLU)."""
    orig_shape = x.shape
    dtype = x.dtype
    itemsize = jnp.dtype(dtype).itemsize
    n = x.size

    # Tiny / empty inputs: a standalone kernel launch costs more than the ReLU
    # itself, and XLA fuses a bare maximum for free.
    if n == 0 or (not force_pallas and n * itemsize < _PALLAS_MIN_BYTES):
        return jnp.maximum(x, 0)

    # ---- lane-dense 2D view ------------------------------------------------
    lanes = _LANES
    # Sublane multiple for packed vregs: f32->8, bf16/f16->16, int8/fp8->32.
    sublane = {4: 8, 2: 16, 1: 32}.get(itemsize, 8)

    rows = -(-n // lanes)                      # cdiv(n, lanes)
    rows_aligned = _round_up(rows, sublane)

    # Row tile targeting ~_TARGET_BLOCK_BYTES per block.
    tile_rows = max(sublane, (_TARGET_BLOCK_BYTES // (lanes * itemsize)))
    tile_rows = (tile_rows // sublane) * sublane

    # Keep at least 2 grid steps when there is enough data (v7x megacore).
    if rows_aligned >= 2 * sublane:
        half = _round_up((rows + 1) // 2, sublane)
        tile_rows = min(tile_rows, half)
    # Never exceed the (sublane-aligned) total row count.
    tile_rows = max(sublane, min(tile_rows, rows_aligned))

    padded_rows = _round_up(rows, tile_rows)
    padded_n = padded_rows * lanes
    grid = padded_rows // tile_rows

    flat = x.reshape(-1)
    if padded_n != n:
        flat = jnp.pad(flat, (0, padded_n - n))
    x2 = flat.reshape(padded_rows, lanes)

    # Explicit scoped-VMEM budget: 2 buffers (in) + 2 buffers (out) + margin,
    # capped below v7x's 64 MiB physical VMEM.
    block_bytes = tile_rows * lanes * itemsize
    vmem_limit = min(64 << 20, max(4 * block_bytes + (4 << 20), 16 << 20))

    out2 = pl.pallas_call(
        _relu_kernel,
        out_shape=jax.ShapeDtypeStruct((padded_rows, lanes), dtype),
        grid_spec=pltpu.PrefetchScalarGridSpec(
            num_scalar_prefetch=0,
            grid=(grid,),
            in_specs=[pl.BlockSpec((tile_rows, lanes), lambda i: (i, 0))],
            out_specs=pl.BlockSpec((tile_rows, lanes), lambda i: (i, 0)),
        ),
        compiler_params=pltpu.CompilerParams(
            dimension_semantics=("parallel",),
            vmem_limit_bytes=int(vmem_limit),
        ),
    )(x2)

    out_flat = out2.reshape(-1)
    if padded_n != n:
        out_flat = out_flat[:n]
    return out_flat.reshape(orig_shape)


class RectifiedLinearPallas:
    """Mirror of the PyTorch module. __init__ params kept for shape parity."""

    def __init__(self, input_dim: int, output_dim: int):
        self.dim = input_dim
        # TODO(synk): nn.Dropout(0.1) is constructed in the PyTorch module but
        # never applied in forward, so it is intentionally omitted here.

    def __call__(self, x: jax.Array) -> jax.Array:
        return rectified_linear(x)


if __name__ == "__main__":
    key = jax.random.PRNGKey(0)

    # Small shape consistent with the module's usage (batch, seq, hidden).
    batch, seq, hidden = 2, 8, 32
    x_small = jax.random.normal(key, (batch, seq, hidden), dtype=jnp.float32)

    # Force the Pallas path so the kernel itself compiles and runs on TPU.
    out_small = rectified_linear(x_small, force_pallas=True)
    out_small = jax.block_until_ready(out_small)
    ref_small = jnp.maximum(x_small, 0.0)
    assert out_small.shape == x_small.shape and out_small.dtype == x_small.dtype
    assert jnp.allclose(out_small, ref_small)

    # Exercise the padded, multi-block (>=2 grid steps) path with an awkward
    # (non-multiple-of-8/128) shape.
    k2 = jax.random.PRNGKey(1)
    x_big = jax.random.normal(k2, (4, 400, 257), dtype=jnp.float32)
    out_big = jax.block_until_ready(rectified_linear(x_big, force_pallas=True))
    assert jnp.allclose(out_big, jnp.maximum(x_big, 0.0))

    # Module wrapper (auto-dispatch; tiny shape fuses into plain jnp.maximum).
    mod = RectifiedLinearPallas(input_dim=hidden, output_dim=hidden)
    out_mod = jax.block_until_ready(mod(x_small))
    assert jnp.allclose(out_mod, ref_small)

    print("KERNEL_OK")
</pallas_src>

<mosaic_0001>
module attributes {stable_mosaic.version = 11 : i64} {
  func.func @_relu_kernel(%arg0: i32, %arg1: memref<8x1024xf32, #tpu.memory_space<vmem>>, %arg2: memref<8x1024xf32, #tpu.memory_space<vmem>>) attributes {dimension_semantics = [#tpu.dimension_semantics<parallel>], iteration_bounds = array<i64: 1>, scalar_prefetch = 0 : i64, scratch_operands = 0 : i64, tpu.core_type = #tpu.core_type<tc>, window_params = [{transform_indices = @transform_0, window_bounds = array<i64: 8, 1024>}, {transform_indices = @transform_1, window_bounds = array<i64: 8, 1024>}]} {
    %c0 = arith.constant 0 : index
    %c0_0 = arith.constant 0 : index
    %0 = vector.load %arg1[%c0, %c0_0] : memref<8x1024xf32, #tpu.memory_space<vmem>>, vector<8x1024xf32>
    %cst = arith.constant 0.000000e+00 : f32
    %1 = vector.broadcast %cst : f32 to vector<8x1024xf32>
    %2 = arith.maximumf %0, %1 : vector<8x1024xf32>
    %c0_1 = arith.constant 0 : index
    %c0_2 = arith.constant 0 : index
    %3 = vector.load %arg2[%c0_1, %c0_2] : memref<8x1024xf32, #tpu.memory_space<vmem>>, vector<8x1024xf32>
    tpu.vector_store %arg2[%c0_1, %c0_2], %2 {strides = array<i32>} : memref<8x1024xf32, #tpu.memory_space<vmem>>, vector<8x1024xf32>,
    return
  }
  func.func @transform_0(%arg0: i32) -> (i32, i32) {
    %c0_i32 = arith.constant 0 : i32
    %c0_i32_0 = arith.constant 0 : i32
    return %arg0, %c0_i32 : i32, i32
  }
  func.func @transform_1(%arg0: i32) -> (i32, i32) {
    %c0_i32 = arith.constant 0 : i32
    %c0_i32_0 = arith.constant 0 : i32
    return %arg0, %c0_i32 : i32, i32
  }
}

</mosaic_0001>

<bundles_post_ra>
// kernel: tpu_custom_call.1
= control target key start
LH: loop header
LB: loop body
LE: loop exit
PB: predicated region body
PF: predicated region fallthrough
CT: control target
= control target key end

     0   :  { %6 = vsyncpa [#allocation3], 0  ;;  %s146_s0 = inlined_call_operand.hbm [shape: f32[8,1024], index: 0, kind: input, shape index: {}]   ;;  %s147_s1 = inlined_call_operand.hbm [shape: f32[8,1024], index: 1, kind: output, shape index: {}]  }
   0x1   :  { %7 = vsyncpa [#allocation4], 0  ;;  %s110_s6 = smov [#allocation2]   ;;  %s62_s10 = scalar_lea.hbm %s146_s0, 1024 }
   0x2   :  { %s14_s7 = sshll.u32 %s110_s6, 4  ;;  %p63_p0 = scmp.ne.s32.totalorder %s146_s0, %s62_s10  ;;  %s15_s7 = int_to_ptr.vmem [resolvable:$true] %s14_s7 }
   0x3   :  { %p66_p1 = scmp.lt.u32.totalorder %s62_s10, %s146_s0 }
   0x5   :  { %p68_p2 = pnand %p66_p1, %p63_p0 }
   0x7   :  { %71 = shalt.err (!%p68_p2)
}
   0x8   :  { %s72_s15 = scalar_lea.vmem %s15_s7, 1024  ;;  %p77_p4 = scmp.lt.s32.totalorder %s15_s7, %s15_s7 }
   0x9   :  { %p73_p3 = scmp.ne.s32.totalorder %s15_s7, %s72_s15  ;;  %p78_p5 = scmp.lt.s32.totalorder %s72_s15, %s72_s15 }
   0xb   :  { %p79_p6 = por %p78_p5, %p77_p4 }
   0xd   :  { %p80_p7 = pnand %p79_p6, %p73_p3 }
   0xf   :  { %83 = shalt.err (!%p80_p7)
}
  0x10   :  { %17 = dma.hbm_to_vmem [thread:$0]  %s146_s0, 1024, %s15_s7, [#allocation3]  }
  0x11   :  { %106 = dma.done.wait [#allocation3], 1024  }
  0x12   :  { %107 = vsyncadd [#allocation3], 4294966272  ;;  %v21_v0 = vld [vmem:[#allocation2] sm:$0xff]  ;;  %v22_v1 = vld [vmem:[#allocation2 + $0x8] sm:$0xff]  ;;  %s111_s18 = smov [#allocation5]  }
  0x13   :  { %v23_v2 = vld [vmem:[#allocation2 + $0x10] sm:$0xff]  ;;  %s51_s19 = sshll.u32 %s111_s18, 4  ;;  %v29_v3 = vmax.f32 %v21_v0, 0.0  ;;  %v30_v4 = vmax.f32 %v22_v1, 0.0  ;;  %v24_v6 = vld [vmem:[#allocation2 + $0x18] sm:$0xff]  ;;  %v25_v7 = vld [vmem:[#allocation2 + $0x20] sm:$0xff]  ;;  %s52_s19 = int_to_ptr.vmem [resolvable:$true] %s51_s19 }
  0x14   :  { %v31_v5 = vmax.f32 %v23_v2, 0.0  ;;  %v26_v8 = vld [vmem:[#allocation2 + $0x28] sm:$0xff]  ;;  %v32_v9 = vmax.f32 %v24_v6, 0.0  ;;  %v33_v10 = vmax.f32 %v25_v7, 0.0  ;;  %v27_v12 = vld [vmem:[#allocation2 + $0x30] sm:$0xff]  ;;  %v28_v13 = vld [vmem:[#allocation2 + $0x38] sm:$0xff]  ;;  %p89_p9 = scmp.lt.s32.totalorder %s52_s19, %s52_s19 }
  0x15   :  { %v34_v11 = vmax.f32 %v26_v8, 0.0  ;;  %37 = vst [vmem:[#allocation5] sm:$0xff] %v29_v3  ;;  %38 = vst [vmem:[#allocation5 + $0x8] sm:$0xff] %v30_v4  ;;  %v35_v14 = vmax.f32 %v27_v12, 0.0  ;;  %v36_v15 = vmax.f32 %v28_v13, 0.0  ;;  %s84_s0 = scalar_lea.vmem %s52_s19, 1024 }
  0x16   :  { %39 = vst [vmem:[#allocation5 + $0x10] sm:$0xff] %v31_v5  ;;  %40 = vst [vmem:[#allocation5 + $0x18] sm:$0xff] %v32_v9  ;;  %p85_p8 = scmp.ne.s32.totalorder %s52_s19, %s84_s0  ;;  %p90_p10 = scmp.lt.s32.totalorder %s84_s0, %s84_s0 }
  0x17   :  { %41 = vst [vmem:[#allocation5 + $0x20] sm:$0xff] %v33_v10  ;;  %42 = vst [vmem:[#allocation5 + $0x28] sm:$0xff] %v34_v11 }
  0x18   :  { %43 = vst [vmem:[#allocation5 + $0x30] sm:$0xff] %v35_v14  ;;  %44 = vst [vmem:[#allocation5 + $0x38] sm:$0xff] %v36_v15  ;;  %p91_p11 = por %p90_p10, %p89_p9 }
  0x1a   :  { %p92_p12 = pnand %p91_p11, %p85_p8 }
  0x1c   :  { %95 = shalt.err (!%p92_p12)
}
  0x1d   :  { %s96_s22 = scalar_lea.hbm %s147_s1, 1024 }
  0x1e   :  { %p97_p13 = scmp.ne.s32.totalorder %s147_s1, %s96_s22  ;;  %p100_p0 = scmp.lt.u32.totalorder %s96_s22, %s147_s1 }
  0x20   :  { %p102_p1 = pnand %p100_p0, %p97_p13 }
  0x22   :  { %105 = shalt.err (!%p102_p1)
}
  0x23   :  { %54 = dma.vmem_to_hbm [thread:$0]  %s52_s19, 1024, %s147_s1, [#allocation4]  }
  0x24   :  { %108 = dma.done.wait [#allocation4], 1024  }
  0x25   :  { %109 = vsyncadd [#allocation4], 4294966272 }
  0x26   :  { %58 = vsyncpa [#allocation3], 1 }
  0x27   :  { %59 = vsyncpa [#allocation4], 1 }

</bundles_post_ra>
